<compile_context>
chip_gen: v7x
topology: tpu7x:2x2x1
jax: 0.10.0
libtpu: 0.0.40
codegen_flags: <defaults>
</compile_context>

<pallas_src>
import functools
import math

import jax
import jax.numpy as jnp
from jax.experimental import pallas as pl
from jax.experimental.pallas import tpu as pltpu


# ----------------------------- Pallas kernel --------------------------------


def _thp_intensity_kernel(zu_ref, zv_ref, et_ref, temp_ref, w_ref, scal_ref, out_ref):
    # zu/zv: (D, TM) bf16 | et/temp: (1, TM) f32 | w: (8, D) bf16 | scal: SMEM f32[8]
    w = w_ref[...]
    # D-reduction on the MXU: two bf16 matmuls, f32 accumulation.  Row k of g01 is
    # ws_k.zu + ws_k.zv (rows >= 2 are zero padding and ignored).
    g01 = (jnp.dot(w, zu_ref[...], preferred_element_type=jnp.float32)
           + jnp.dot(w, zv_ref[...], preferred_element_type=jnp.float32))   # (8, TM)

    is_rel1 = et_ref[...] > 0.0                                              # (1, TM)
    g = jnp.where(is_rel1, g01[1:2, :] + scal_ref[1], g01[0:1, :] + scal_ref[0])
    inv_psi = jnp.where(is_rel1, scal_ref[3], scal_ref[2])
    psi = jnp.where(is_rel1, scal_ref[5], scal_ref[4])
    alpha = jnp.where(is_rel1, scal_ref[7], scal_ref[6])

    g = g + alpha * temp_ref[...]
    g_psi = jnp.clip(g * inv_psi, -75.0, 75.0)          # inv_psi = 1/(psi+1e-7), folded
    out_ref[...] = psi * (jnp.log(1.0 + jnp.exp(-g_psi)) + g_psi)


def _tpu_caps():
    """Best-effort (vmem_budget_bytes, tensorcores_per_chip) with safe fallbacks."""
    vmem_budget = 20 << 20            # comfortably inside the 32 MiB scoped limit we request
    n_cores = 1
    try:                              # v7x: 2 TensorCores per chip -> megacore grid sharding
        kind = jax.devices()[0].device_kind.lower()
        if ("v7" in kind) or ("7x" in kind):
            n_cores = 2
    except Exception:
        pass
    try:
        info = pltpu.get_tpu_info()
        cap = int(getattr(info, "vmem_capacity_bytes", 0) or 0)
        if cap:
            vmem_budget = min(vmem_budget, max(4 << 20, cap // 4))
    except Exception:
        pass
    return vmem_budget, n_cores


def thp_intensity_pallas(zu_T, zv_T, et, temporal, W, bias, psi, alpha, tm_max=32768):
    """THP_intensity (symmetric=True) for M event rows.  Returns (M,) float32.

    zu_T / zv_T are (D, M) "events-on-lanes" operands (any float dtype; streamed as
    bf16 - an intentional bandwidth/accuracy trade).  All math is f32-accumulated.
    """
    D, M = zu_T.shape

    # Per-relation parameters with constants folded out of the hot path.
    ws = 0.5 * (W[:, :D] + W[:, D:])                                         # (2, D)
    w8 = jnp.zeros((8, D), jnp.float32).at[:2, :].set(ws).astype(jnp.bfloat16)
    inv_psi = 1.0 / (psi + 1e-7)
    scal = jnp.concatenate([bias, inv_psi, psi, alpha]).astype(jnp.float32)  # (8,)

    # Tiling: biggest lane tile that fits the VMEM budget (double-buffered streams +
    # f32 kernel temporaries), padding M only up to the next 128 multiple per grid step.
    vmem_budget, n_cores = _tpu_caps()
    col_bytes = 8 * D + 24 + 64
    tm_cap = max(128, min(tm_max, vmem_budget // col_bytes))
    blocks = pl.cdiv(M, 128)
    grid = pl.cdiv(blocks, max(1, tm_cap // 128))
    # Shard across TensorCores only when each share still has >= 8192 lanes.
    if n_cores > 1 and grid < n_cores and blocks >= n_cores * 64:
        grid = n_cores
    tm = 128 * pl.cdiv(blocks, grid)
    Mp = tm * grid
    pad = Mp - M

    zu_p = jnp.pad(zu_T.astype(jnp.bfloat16), ((0, 0), (0, pad)))            # (D, Mp)
    zv_p = jnp.pad(zv_T.astype(jnp.bfloat16), ((0, 0), (0, pad)))            # (D, Mp)
    et_p = jnp.pad(et.astype(jnp.float32), ((0, pad),)).reshape(1, Mp)
    tmp_p = jnp.pad(temporal.astype(jnp.float32), ((0, pad),)).reshape(1, Mp)

    # NOTE: at tm >= 8K lanes DMA latency is fully hidden; no need for pl.Buffered(3).
    out = pl.pallas_call(
        _thp_intensity_kernel,
        out_shape=jax.ShapeDtypeStruct((1, Mp), jnp.float32),
        grid=(grid,),
        in_specs=[
            pl.BlockSpec((D, tm), lambda i: (0, i)),
            pl.BlockSpec((D, tm), lambda i: (0, i)),
            pl.BlockSpec((1, tm), lambda i: (0, i)),
            pl.BlockSpec((1, tm), lambda i: (0, i)),
            pl.BlockSpec((8, D), lambda i: (0, 0)),              # resident weights
            pl.BlockSpec(memory_space=pltpu.MemorySpace.SMEM),   # scalar params
        ],
        out_specs=pl.BlockSpec((1, tm), lambda i: (0, i)),       # lane-dense stores
        compiler_params=pltpu.CompilerParams(
            dimension_semantics=("parallel",),
            vmem_limit_bytes=32 << 20),
    )(zu_p, zv_p, et_p, tmp_p, w8, scal)
    return out[0, :M]


# ------------------------- plain-JAX reference (check) ----------------------


def thp_intensity_ref(z_u, z_v, et, temporal, W, bias, psi, alpha, quantize=False):
    """Reference THP_intensity (symmetric=True).

    quantize=True mirrors the kernel's bf16-streaming / folded-weight contract;
    quantize=False is the literal f32 torch math.
    """
    D = z_u.shape[1]
    if quantize:
        ws = (0.5 * (W[:, :D] + W[:, D:])).astype(jnp.bfloat16).astype(jnp.float32)
        zu = z_u.astype(jnp.bfloat16).astype(jnp.float32)
        zv = z_v.astype(jnp.bfloat16).astype(jnp.float32)
        g01 = zu @ ws.T + zv @ ws.T + bias                                   # (M, 2)
    else:
        z_uv = jnp.concatenate([z_u, z_v], axis=1)
        z_vu = jnp.concatenate([z_v, z_u], axis=1)
        g01 = 0.5 * (z_uv @ W.T + z_vu @ W.T) + bias                         # (M, 2)
    k = (et > 0).astype(jnp.int32)
    g = jnp.take_along_axis(g01, k[:, None], axis=1)[:, 0]
    psi_k = psi[k]
    alpha_k = alpha[k]
    g = g + alpha_k * temporal
    g_psi = jnp.clip(g / (psi_k + 1e-7), -75.0, 75.0)
    return psi_k * (jnp.log(1.0 + jnp.exp(-g_psi)) + g_psi)


# ------------------------------- forward pass --------------------------------


def decoder_tp_forward(params, all_embeddings, assoc, src, pos_dst, last_update,
                       cur_time, u_non_embeddings, v_non_embeddings, neg_dst, et,
                       num_surv_samples):
    """Reproduces DecoderTP.forward for: et is not None, last_time_pos=None,
    unit_sampling=True, accu_non_events=None, neg_dst given (THP branch)."""
    W, bias, psi, alpha = params
    N = src.shape[0]
    S = num_surv_samples

    src_i = assoc[src]
    dst_i = assoc[pos_dst]
    neg_i = assoc[neg_dst]

    lu_src = last_update[src_i]
    lu_dst = last_update[dst_i]
    lu_neg = last_update[neg_i]

    last_time_pos = jnp.maximum(lu_src, lu_dst)               # max over cat(...,dim=1)
    td_pos = cur_time - last_time_pos                         # (N,)

    # unit_sampling=True
    td_surv_step = td_pos / (S - 1)                           # (N,)
    td_surv_base = jnp.linspace(0.0, S - 1, S, dtype=jnp.float32)[:, None]   # (S,1)
    td_surv = td_surv_base * td_surv_step[None, :]            # (S, N)

    # et is not None -> THP branch
    temporal_pos = td_pos / (last_time_pos + 1.0)                            # (N,)
    temporal_surv = (td_surv / (last_time_pos + 1.0)[None, :]).reshape(-1)   # (S*N,)

    # cond_density branch inputs (neg_dst provided); no_grad is a functional no-op.
    last_time_neg = jnp.maximum(lu_src, lu_neg)
    td_neg = cur_time - last_time_neg
    temporal_neg = td_neg / (last_time_neg + 1.0)

    # Events-on-lanes (D, M) bf16 operands built directly at the gather/concat step,
    # so the kernel wrapper does not re-read the streams for a cast+transpose pass.
    emb_T = all_embeddings.astype(jnp.bfloat16).T             # (D, num_nodes), one small pass
    # TODO(synk): an upstream producer emitting (D, S*N) bf16 u/v non-event embeddings
    # directly would drop the remaining cast+transpose on the survival stream.
    zu_all = jnp.concatenate(
        [emb_T[:, src_i], u_non_embeddings.astype(jnp.bfloat16).T, emb_T[:, src_i]], axis=1)
    zv_all = jnp.concatenate(
        [emb_T[:, dst_i], v_non_embeddings.astype(jnp.bfloat16).T, emb_T[:, neg_i]], axis=1)
    et_all = jnp.concatenate([et, jnp.tile(et, S), et], axis=0)
    temporal_all = jnp.concatenate([temporal_pos, temporal_surv, temporal_neg], axis=0)

    # One fused pallas_call over rows = [pos (N) | survival (S*N) | neg (N)].
    lam_all = thp_intensity_pallas(zu_all, zv_all, et_all, temporal_all, W, bias, psi, alpha)
    lambda_uv = lam_all[:N]                                   # (N,)
    lambda_surv = lam_all[N:N + S * N].reshape(S, N)          # (S, N)
    lambda_uv_neg = lam_all[N + S * N:]                       # (N,)

    accu_non_events = jnp.zeros((N,), jnp.float32)
    integral = jnp.sum(td_surv_step[None, :] * lambda_surv, axis=0) + accu_non_events
    loss_surv = jnp.sum(integral)
    loss_lambda = -jnp.sum(jnp.log(lambda_uv + 1e-7))

    # torch computes surv = exp(-integral) under no_grad but never returns it.
    cond_density = [lambda_uv, lambda_uv_neg]

    # TODO(synk): forward-only; differentiating through the pallas_call needs a custom_vjp.
    return loss_lambda / N, loss_surv / N, cond_density


# ---------------------------------- main -------------------------------------


if __name__ == "__main__":
    # Small, deterministic problem sizes.
    num_nodes = 20
    embed_dim = 32            # D
    num_events = 16           # N = len(src)
    num_surv_samples = 8      # S
    num_rel = 2

    key = jax.random.PRNGKey(0)
    keys = jax.random.split(key, 12)

    # Parameters (deterministic init, mimicking Linear(2D -> 1) per relation).
    bound = 1.0 / math.sqrt(2 * embed_dim)
    W = jax.random.uniform(keys[0], (num_rel, 2 * embed_dim),
                           minval=-bound, maxval=bound, dtype=jnp.float32)
    bias = jax.random.uniform(keys[1], (num_rel,),
                              minval=-bound, maxval=bound, dtype=jnp.float32)
    psi = 0.5 * jnp.ones((num_rel,), jnp.float32)
    alpha = -0.1 * jnp.ones((num_rel,), jnp.float32)
    # TODO(synk): w_t is unused in the THP (et != None) branch; the decay branch uses it.
    params = (W, bias, psi, alpha)

    # Inputs.
    all_embeddings = jax.random.normal(keys[2], (num_nodes, embed_dim), jnp.float32)
    assoc = jnp.arange(num_nodes, dtype=jnp.int32)
    src = jax.random.randint(keys[3], (num_events,), 0, num_nodes, jnp.int32)
    pos_dst = jax.random.randint(keys[4], (num_events,), 0, num_nodes, jnp.int32)
    neg_dst = jax.random.randint(keys[5], (num_events,), 0, num_nodes, jnp.int32)
    last_update = jax.random.uniform(keys[6], (num_nodes,), jnp.float32, 0.0, 10.0)
    cur_time = 10.0 + jax.random.uniform(keys[7], (num_events,), jnp.float32, 0.0, 5.0)
    u_non = jax.random.normal(keys[8], (num_surv_samples * num_events, embed_dim),
                              jnp.float32)
    v_non = jax.random.normal(keys[9], (num_surv_samples * num_events, embed_dim),
                              jnp.float32)
    et = jax.random.randint(keys[10], (num_events,), 0, num_rel, jnp.int32)

    # Sanity checks: Pallas THP intensity vs plain-JAX references.
    temporal_chk = jax.random.uniform(keys[11], (num_events,), jnp.float32)
    zu_chk = all_embeddings[src]
    zv_chk = all_embeddings[pos_dst]
    lam_pl = jax.block_until_ready(
        thp_intensity_pallas(zu_chk.T, zv_chk.T, et, temporal_chk, W, bias, psi, alpha))
    lam_q = thp_intensity_ref(zu_chk, zv_chk, et, temporal_chk, W, bias, psi, alpha,
                              quantize=True)    # same bf16 contract -> tight tolerance
    assert jnp.allclose(lam_pl, lam_q, atol=2e-3, rtol=2e-3), "kernel vs bf16 ref mismatch"
    lam_f = thp_intensity_ref(zu_chk, zv_chk, et, temporal_chk, W, bias, psi, alpha,
                              quantize=False)   # exact f32 torch math -> bf16-stream tolerance
    assert jnp.allclose(lam_pl, lam_f, atol=2e-2, rtol=2e-2), "kernel vs f32 ref mismatch"

    fwd = jax.jit(functools.partial(decoder_tp_forward,
                                    num_surv_samples=num_surv_samples))
    loss_lambda, loss_surv, cond_density = fwd(
        params, all_embeddings, assoc, src, pos_dst, last_update, cur_time,
        u_non, v_non, neg_dst, et)

    jax.block_until_ready((loss_lambda, loss_surv, cond_density[0], cond_density[1]))
    assert jnp.isfinite(loss_lambda) and jnp.isfinite(loss_surv)
    print("KERNEL_OK")
</pallas_src>

<mosaic_0001>
module attributes {stable_mosaic.version = 11 : i64} {
  func.func @_thp_intensity_kernel(%arg0: i32, %arg1: memref<32x128xbf16, #tpu.memory_space<vmem>>, %arg2: memref<32x128xbf16, #tpu.memory_space<vmem>>, %arg3: memref<1x128xf32, #tpu.memory_space<vmem>>, %arg4: memref<1x128xf32, #tpu.memory_space<vmem>>, %arg5: memref<8x32xbf16, #tpu.memory_space<vmem>>, %arg6: memref<8xf32, #tpu.memory_space<smem>>, %arg7: memref<1x128xf32, #tpu.memory_space<vmem>>) attributes {dimension_semantics = [#tpu.dimension_semantics<parallel>], iteration_bounds = array<i64: 1>, scalar_prefetch = 0 : i64, scratch_operands = 0 : i64, tpu.core_type = #tpu.core_type<tc>, window_params = [{transform_indices = @transform_0, window_bounds = array<i64: 32, 128>}, {transform_indices = @transform_1, window_bounds = array<i64: 32, 128>}, {transform_indices = @transform_2, window_bounds = array<i64: 1, 128>}, {transform_indices = @transform_3, window_bounds = array<i64: 1, 128>}, {pipeline_mode = #tpu.pipeline_mode<synchronous>, transform_indices = @transform_4, window_bounds = array<i64: 8, 32>}, {transform_indices = @transform_5, window_bounds = array<i64: 8>}, {transform_indices = @transform_6, window_bounds = array<i64: 1, 128>}]} {
    %c0 = arith.constant 0 : index
    %c0_0 = arith.constant 0 : index
    %0 = vector.load %arg5[%c0, %c0_0] : memref<8x32xbf16, #tpu.memory_space<vmem>>, vector<8x32xbf16>
    %c0_1 = arith.constant 0 : index
    %c0_2 = arith.constant 0 : index
    %1 = vector.load %arg1[%c0_1, %c0_2] : memref<32x128xbf16, #tpu.memory_space<vmem>>, vector<32x128xbf16>
    %cst = arith.constant dense<0.000000e+00> : vector<8x128xf32>
    %2 = tpu.matmul %0, %1, %cst {dimension_numbers = #tpu.dot_dimension_numbers<[1], [0], [0], [1], [0, 0, 1, 1], [], []>} : vector<8x32xbf16>, vector<32x128xbf16>, vector<8x128xf32> -> vector<8x128xf32>
    %c0_3 = arith.constant 0 : index
    %c0_4 = arith.constant 0 : index
    %3 = vector.load %arg2[%c0_3, %c0_4] : memref<32x128xbf16, #tpu.memory_space<vmem>>, vector<32x128xbf16>
    %cst_5 = arith.constant dense<0.000000e+00> : vector<8x128xf32>
    %4 = tpu.matmul %0, %3, %cst_5 {dimension_numbers = #tpu.dot_dimension_numbers<[1], [0], [0], [1], [0, 0, 1, 1], [], []>} : vector<8x32xbf16>, vector<32x128xbf16>, vector<8x128xf32> -> vector<8x128xf32>
    %5 = arith.addf %2, %4 : vector<8x128xf32>
    %c0_6 = arith.constant 0 : index
    %c0_7 = arith.constant 0 : index
    %6 = vector.load %arg3[%c0_6, %c0_7] : memref<1x128xf32, #tpu.memory_space<vmem>>, vector<1x128xf32>
    %cst_8 = arith.constant 0.000000e+00 : f32
    %7 = vector.broadcast %cst_8 : f32 to vector<1x128xf32>
    %8 = arith.cmpf ogt, %6, %7 : vector<1x128xf32>
    %9 = vector.extract_strided_slice %5 {offsets = [1, 0], sizes = [1, 128], strides = [1, 1]} : vector<8x128xf32> to vector<1x128xf32>
    %c1 = arith.constant 1 : index
    %10 = memref.load %arg6[%c1] : memref<8xf32, #tpu.memory_space<smem>>
    %11 = vector.broadcast %10 : f32 to vector<1x128xf32>
    %12 = arith.addf %9, %11 : vector<1x128xf32>
    %13 = vector.extract_strided_slice %5 {offsets = [0, 0], sizes = [1, 128], strides = [1, 1]} : vector<8x128xf32> to vector<1x128xf32>
    %c0_9 = arith.constant 0 : index
    %14 = memref.load %arg6[%c0_9] : memref<8xf32, #tpu.memory_space<smem>>
    %15 = vector.broadcast %14 : f32 to vector<1x128xf32>
    %16 = arith.addf %13, %15 : vector<1x128xf32>
    %17 = arith.select %8, %12, %16 : vector<1x128xi1>, vector<1x128xf32>
    %c3 = arith.constant 3 : index
    %18 = memref.load %arg6[%c3] : memref<8xf32, #tpu.memory_space<smem>>
    %c2 = arith.constant 2 : index
    %19 = memref.load %arg6[%c2] : memref<8xf32, #tpu.memory_space<smem>>
    %20 = vector.broadcast %18 : f32 to vector<1x128xf32>
    %21 = vector.broadcast %19 : f32 to vector<1x128xf32>
    %22 = arith.select %8, %20, %21 : vector<1x128xi1>, vector<1x128xf32>
    %c5 = arith.constant 5 : index
    %23 = memref.load %arg6[%c5] : memref<8xf32, #tpu.memory_space<smem>>
    %c4 = arith.constant 4 : index
    %24 = memref.load %arg6[%c4] : memref<8xf32, #tpu.memory_space<smem>>
    %25 = vector.broadcast %23 : f32 to vector<1x128xf32>
    %26 = vector.broadcast %24 : f32 to vector<1x128xf32>
    %27 = arith.select %8, %25, %26 : vector<1x128xi1>, vector<1x128xf32>
    %c7 = arith.constant 7 : index
    %28 = memref.load %arg6[%c7] : memref<8xf32, #tpu.memory_space<smem>>
    %c6 = arith.constant 6 : index
    %29 = memref.load %arg6[%c6] : memref<8xf32, #tpu.memory_space<smem>>
    %30 = vector.broadcast %28 : f32 to vector<1x128xf32>
    %31 = vector.broadcast %29 : f32 to vector<1x128xf32>
    %32 = arith.select %8, %30, %31 : vector<1x128xi1>, vector<1x128xf32>
    %c0_10 = arith.constant 0 : index
    %c0_11 = arith.constant 0 : index
    %33 = vector.load %arg4[%c0_10, %c0_11] : memref<1x128xf32, #tpu.memory_space<vmem>>, vector<1x128xf32>
    %34 = arith.mulf %32, %33 : vector<1x128xf32>
    %35 = arith.addf %17, %34 : vector<1x128xf32>
    %36 = arith.mulf %35, %22 : vector<1x128xf32>
    %cst_12 = arith.constant -7.500000e+01 : f32
    %cst_13 = arith.constant 7.500000e+01 : f32
    %37 = vector.broadcast %cst_12 : f32 to vector<1x128xf32>
    %38 = arith.maximumf %37, %36 : vector<1x128xf32>
    %39 = vector.broadcast %cst_13 : f32 to vector<1x128xf32>
    %40 = arith.minimumf %39, %38 : vector<1x128xf32>
    %cst_14 = arith.constant 0.000000e+00 : f32
    %41 = vector.broadcast %cst_14 : f32 to vector<1x128xf32>
    %42 = arith.subf %41, %40 : vector<1x128xf32>
    %43 = math.exp %42 : vector<1x128xf32>
    %cst_15 = arith.constant 1.000000e+00 : f32
    %44 = vector.broadcast %cst_15 : f32 to vector<1x128xf32>
    %45 = arith.addf %44, %43 : vector<1x128xf32>
    %46 = math.log %45 : vector<1x128xf32>
    %47 = arith.addf %46, %40 : vector<1x128xf32>
    %48 = arith.mulf %27, %47 : vector<1x128xf32>
    %c0_16 = arith.constant 0 : index
    %c0_17 = arith.constant 0 : index
    %49 = vector.load %arg7[%c0_16, %c0_17] : memref<1x128xf32, #tpu.memory_space<vmem>>, vector<1x128xf32>
    tpu.vector_store %arg7[%c0_16, %c0_17], %48 {strides = array<i32>} : memref<1x128xf32, #tpu.memory_space<vmem>>, vector<1x128xf32>,
    return
  }
  func.func @transform_0(%arg0: i32) -> (i32, i32) {
    %c0_i32 = arith.constant 0 : i32
    %c0_i32_0 = arith.constant 0 : i32
    return %c0_i32, %arg0 : i32, i32
  }
  func.func @transform_1(%arg0: i32) -> (i32, i32) {
    %c0_i32 = arith.constant 0 : i32
    %c0_i32_0 = arith.constant 0 : i32
    return %c0_i32, %arg0 : i32, i32
  }
  func.func @transform_2(%arg0: i32) -> (i32, i32) {
    %c0_i32 = arith.constant 0 : i32
    %c0_i32_0 = arith.constant 0 : i32
    return %c0_i32, %arg0 : i32, i32
  }
  func.func @transform_3(%arg0: i32) -> (i32, i32) {
    %c0_i32 = arith.constant 0 : i32
    %c0_i32_0 = arith.constant 0 : i32
    return %c0_i32, %arg0 : i32, i32
  }
  func.func @transform_4(%arg0: i32) -> (i32, i32) {
    %c0_i32 = arith.constant 0 : i32
    %c0_i32_0 = arith.constant 0 : i32
    %c0_i32_1 = arith.constant 0 : i32
    return %c0_i32, %c0_i32_0 : i32, i32
  }
  func.func @transform_5(%arg0: i32) -> i32 {
    %c0_i32 = arith.constant 0 : i32
    %c0_i32_0 = arith.constant 0 : i32
    return %c0_i32 : i32
  }
  func.func @transform_6(%arg0: i32) -> (i32, i32) {
    %c0_i32 = arith.constant 0 : i32
    %c0_i32_0 = arith.constant 0 : i32
    return %c0_i32, %arg0 : i32, i32
  }
}

</mosaic_0001>

<bundles_post_ra>
// kernel: tpu_custom_call.1
= control target key start
LH: loop header
LB: loop body
LE: loop exit
PB: predicated region body
PF: predicated region fallthrough
CT: control target
= control target key end

     0   :  { %11 = vsyncpa [#allocation3], 0  ;;  %s492_s0 = inlined_call_operand.hbm [shape: bf16[32,128], index: 0, kind: input, shape index: {}]   ;;  %s493_s1 = inlined_call_operand.hbm [shape: bf16[32,128], index: 1, kind: input, shape index: {}]   ;;  %s494_s2 = inlined_call_operand.vmem [shape: f32[1,128], index: 2, kind: input, shape index: {}]   ;;  %s495_s3 = inlined_call_operand.vmem [shape: f32[1,128], index: 3, kind: input, shape index: {}]   ;;  %s496_s4 = inlined_call_operand.vmem [shape: bf16[8,32], index: 4, kind: input, shape index: {}]   ;;  %s497_s5 = inlined_call_operand.vmem [shape: f32[8], index: 5, kind: input, shape index: {}]   ;;  %s498_s6 = inlined_call_operand.hbm [shape: f32[1,128], index: 6, kind: output, shape index: {}]  }
   0x1   :  { %12 = vsyncpa [#allocation7], 0 }
   0x2   :  { %13 = vsyncpa [#allocation5], 0 }
   0x3   :  { %14 = vsyncpa [#allocation4], 0  ;;  %s396_s21 = smov [#allocation2]   ;;  %s310_s25 = scalar_lea.hbm %s492_s0, 256 }
   0x4   :  { %s20_s22 = sshll.u32 %s396_s21, 4  ;;  %p311_p0 = scmp.ne.s32.totalorder %s492_s0, %s310_s25  ;;  %s21_s22 = int_to_ptr.vmem [resolvable:$true] %s20_s22 }
   0x5   :  { %p314_p1 = scmp.lt.u32.totalorder %s310_s25, %s492_s0 }
   0x7   :  { %p316_p2 = pnand %p314_p1, %p311_p0 }
   0x9   :  { %319 = shalt.err (!%p316_p2)
}
   0xa   :  { %s320_s30 = scalar_lea.vmem %s21_s22, 256  ;;  %p325_p4 = scmp.lt.s32.totalorder %s21_s22, %s21_s22 }
   0xb   :  { %p321_p3 = scmp.ne.s32.totalorder %s21_s22, %s320_s30  ;;  %p326_p5 = scmp.lt.s32.totalorder %s320_s30, %s320_s30 }
   0xd   :  { %p327_p6 = por %p326_p5, %p325_p4 }
   0xf   :  { %p328_p7 = pnand %p327_p6, %p321_p3 }
  0x11   :  { %331 = shalt.err (!%p328_p7)
}
  0x12   :  { %s397_s7 = smov 64   ;;  %s398_s8 = smov 4  }
  0x13   :  { %26 = dma.hbm_to_vmem [thread:$0]  %s492_s0, 256, %s21_s22, [#allocation3], %s397_s7, %s397_s7, %s398_s8  }
  0x14   :  { %s399_s11 = smov [#allocation6]   ;;  %s51_s15 = sshll.u32 %s497_s5, 4  ;;  %s52_s15 = int_to_ptr.vmem [resolvable:$true] %s51_s15 }
  0x15   :  { %s32_s12 = sshll.u32 %s399_s11, 4  ;;  %s332_s18 = scalar_lea.hbm %s493_s1, 256  ;;  %s33_s12 = int_to_ptr.vmem [resolvable:$true] %s32_s12 }
  0x16   :  { %p333_p8 = scmp.ne.s32.totalorder %s493_s1, %s332_s18  ;;  %p336_p9 = scmp.lt.u32.totalorder %s332_s18, %s493_s1 }
  0x18   :  { %p338_p10 = pnand %p336_p9, %p333_p8 }
  0x1a   :  { %341 = shalt.err (!%p338_p10)
}
  0x1b   :  { %s342_s0 = scalar_lea.vmem %s33_s12, 256  ;;  %p347_p12 = scmp.lt.s32.totalorder %s33_s12, %s33_s12 }
  0x1c   :  { %p343_p11 = scmp.ne.s32.totalorder %s33_s12, %s342_s0  ;;  %p348_p13 = scmp.lt.s32.totalorder %s342_s0, %s342_s0 }
  0x1e   :  { %p349_p0 = por %p348_p13, %p347_p12 }
  0x20   :  { %p350_p1 = pnand %p349_p0, %p343_p11 }
  0x22   :  { %353 = shalt.err (!%p350_p1)
}
  0x23   :  { %38 = dma.hbm_to_vmem [thread:$0]  %s493_s1, 256, %s33_s12, [#allocation7], %s397_s7, %s397_s7, %s398_s8  }
  0x24   :  { %s354_s24 = scalar_lea.vmem %s52_s15, 16  ;;  %p359_p3 = scmp.lt.s32.totalorder %s52_s15, %s52_s15 }
  0x25   :  { %p355_p2 = scmp.ne.s32.totalorder %s52_s15, %s354_s24  ;;  %p360_p4 = scmp.lt.s32.totalorder %s354_s24, %s354_s24 }
  0x27   :  { %p361_p5 = por %p360_p4, %p359_p3 }
  0x29   :  { %p362_p6 = pnand %p361_p5, %p355_p2 }
  0x2b   :  { %365 = shalt.err (!%p362_p6)
}
  0x2c   :  { %s400_s25 = smov [#allocation8]  }
  0x2d   :  { %54 = dma.vmem_to_smem %s52_s15, 16, %s400_s25, [#allocation5]  }
  0x2e   :  { %388 = dma.done.wait [#allocation3], 256  }
  0x2f   :  { %389 = vsyncadd [#allocation3], 4294967040 }
  0x30   :  { %390 = dma.done.wait [#allocation7], 256  }
  0x31   :  { %391 = vsyncadd [#allocation7], 4294967040 }
  0x32   :  { %392 = dma.done.wait [#allocation5], 16  }
  0x33   :  { %393 = vsyncadd [#allocation5], 4294967280 }
  0x34   :  { %64 = sfence }
  0x35   :  { %v302_v0 = vld [vmem:[#allocation6] sm:$0xff]   ;;  %v401_v1 = vmov 0.0   ;;  %v303_v2 = vld [vmem:[#allocation2] sm:$0xff]   ;;  %v304_v3 = vld [vmem:[#allocation6 + $0x8] sm:$0xff]   ;;  %vm402_vm0 = vmmov 0   ;;  %vm87_vm1 = vcmask 261120   ;;  %v195_v8 = vlaneseq }
  0x36   :  { %276 = vmatprep.subr.bf16.mxu1 %v401_v1  ;;  %284 = vmatprep.subr.bf16.mxu0 %v401_v1  ;;  %v305_v4 = vld [vmem:[#allocation2 + $0x8] sm:$0xff]   ;;  %v66_v5 = vld [vmem:[%s496_s4] sm:$0xf]  ;;  %s262_s27 = sld [smem:[#allocation8 + $0x1]]  ;;  %v403_v6 = vmov 1966171168  }
  0x37   :  { %277 = vmatpush3.bf16.msra.mxu1 %v302_v0  ;;  %280 = vmatprep.mubr.msk.bf16.mxu1 %vm402_vm0, %v401_v1  ;;  %v193_v7 = vunpack.c.l.s4 %v403_v6  ;;  %s267_s28 = sld [smem:[#allocation8 + $0x7]]  ;;  %s268_s29 = sld [smem:[#allocation8 + $0x6]]  ;;  %v196_v10 = vshrl.u32 %v195_v8, 7  ;;  %v183_v12 = vld [vmem:[%s494_s2] sm:$0x1] }
  0x38   :  { %285 = vmatpush3.bf16.msra.mxu0 %v303_v2  ;;  %278 = vmatprep.subr.bf16.mxu1 %v401_v1  ;;  %s188_s30 = sld [smem:[#allocation8]]  ;;  %s263_s4 = sld [smem:[#allocation8 + $0x3]]  ;;  %vm184_vm2 = vcmp.gt.f32.partialorder %v183_v12, 0.0  ;;  %v224_v28 = vld [vmem:[%s495_s3] sm:$0x1] }
  0x39   :  { %286 = vmatprep.subr.bf16.mxu0 %v401_v1  ;;  %288 = vmatprep.mubr.msk.bf16.mxu0 %vm402_vm0, %v401_v1  ;;  %v194_v9 = vunpack.c.0.s8 %v193_v7  ;;  %s264_s9 = sld [smem:[#allocation8 + $0x2]]  ;;  %s265_s3 = sld [smem:[#allocation8 + $0x5]] }
  0x3a   :  { %s266_s11 = sld [smem:[#allocation8 + $0x4]]  ;;  %s404_s12 = smov [#allocation9]  }
  0x3b   :  { %279 = vmatpush3.bf16.msra.mxu1 %v304_v3  ;;  %v197_v17 = vsub.s32 %v194_v9, %v196_v10  ;;  %s245_s13 = sshll.u32 %s404_s12, 4  ;;  %s246_s13 = int_to_ptr.vmem [resolvable:$true] %s245_s13 }
  0x3c   :  { %287 = vmatpush3.bf16.msra.mxu0 %v305_v4  ;;  %v186_v14 = vstv %s262_s27  ;;  %s366_s14 = scalar_lea.vmem %s246_s13, 16  ;;  %s370_s15 = scalar_lea.vmem %s246_s13, 32 }
  0x3d   :  { %v221_v22 = vstv %s267_s28  ;;  %v222_v23 = vstv %s268_s29  ;;  %p367_p7 = scmp.ne.s32.totalorder %s246_s13, %s366_s14  ;;  %p371_p8 = scmp.lt.s32.totalorder %s246_s13, %s246_s13 }
  0x3e   :  { %281 = vmatmul.mubr.msk.bf16.vlgmr.msra.gmra.mrb[0].mxu1 %vm87_vm1, %v66_v5  ;;  %v223_v27 = vsel %vm184_vm2, %v221_v22, %v222_v23  ;;  %v189_v29 = vstv %s188_s30  ;;  %v211_v31 = vstv %s263_s4  ;;  %p372_p9 = scmp.lt.s32.totalorder %s370_s15, %s366_s14 }
  0x3f   :  { %289 = vmatmul.mubr.msk.bf16.vlgmr.msra.gmra.mrb[0].mxu0 %vm87_vm1, %v66_v5  ;;  %v212_v32 = vstv %s264_s9  ;;  %v225_v33 = vmul.f32 %v224_v28, %v223_v27  ;;  %v216_v45 = vstv %s265_s3 }
  0x40   :  { %v213_v37 = vsel %vm184_vm2, %v211_v31, %v212_v32  ;;  %v217_v46 = vstv %s266_s11  ;;  %p373_p10 = por %p372_p9, %p371_p8 }
  0x41   :  { %v218_v49 = vsel %vm184_vm2, %v216_v45, %v217_v46 }
  0x42   :  { %p374_p11 = pnand %p373_p10, %p367_p7 }
 0x111   :  { %v125_v11 = vpop.f32.mrb[0].mxu1 }
 0x112   :  { %v177_v13 = vpop.f32.mrb[0].mxu0  ;;  %v282_v15 = vpop.f32.mrb[1].mxu1 }
 0x113   :  { %v178_v16 = vadd.f32 %v177_v13, %v125_v11  ;;  %v290_v18 = vpop.f32.mrb[1].mxu0  ;;  %v128_v19 = vpop.f32.mrb[2].mxu1 }
 0x114   :  { %v180_v20 = vpop.f32.mrb[2].mxu0  ;;  %v283_v21 = vpop.f32.mrb[3].mxu1 }
 0x115   :  { %v187_v24 = vadd.f32 %v186_v14, %v178_v16  ;;  %v291_v25 = vpop.f32.mrb[3].mxu0  ;;  %v190_v34 = vadd.f32 %v189_v29, %v178_v16 }
 0x117   :  { %v198_v26 = vrot.slane %v187_v24, %v197_v17 }
 0x119   :  { %v199_v30 = vcombine.high %v198_v26, %v198_v26 }
 0x11b   :  { %v206_v35 = vrot.slane %v199_v30, %v197_v17 }
 0x11d   :  { %v208_v36 = vsel %vm184_vm2, %v206_v35, %v190_v34 }
 0x11e   :  { %v226_v38 = vadd.f32 %v225_v33, %v208_v36 }
 0x120   :  { %v227_v39 = vmul.f32 %v226_v38, %v213_v37 }
 0x122   :  { %v269_v40 = vclamps-f32 %v227_v39, 75.0 }
 0x124   :  { %v230_v41 = vsub.f32 0.0, %v269_v40 }
 0x126   :  { %v231_v42 = vmul.f32 1.442695, %v230_v41 }
 0x128   :  { %306 = vpow2.f32 %v231_v42 }
 0x132   :  { %v307_v43 = vpop.eup %306 }
 0x133   :  { %v233_v44 = vadd.f32 1.0, %v307_v43 }
 0x135   :  { %308 = vlog2.f32 %v233_v44 }
 0x13f   :  { %v309_v47 = vpop.eup %308 }
 0x140   :  { %v235_v48 = vmul.f32 0.6931472, %v309_v47 }
 0x142   :  { %v236_v50 = vadd.f32 %v269_v40, %v235_v48 }
 0x144   :  { %v237_v51 = vmul.f32 %v236_v50, %v218_v49 }
 0x146   :  { %238 = vst [vmem:[#allocation9] sm:$0x1] %v237_v51 }
 0x147   :  { %377 = shalt.err (!%p374_p11)
}
 0x148   :  { %s378_s18 = scalar_lea.hbm %s498_s6, 16 }
 0x149   :  { %p379_p12 = scmp.ne.s32.totalorder %s498_s6, %s378_s18  ;;  %p382_p13 = scmp.lt.u32.totalorder %s378_s18, %s498_s6 }
 0x14b   :  { %p384_p0 = pnand %p382_p13, %p379_p12 }
 0x14d   :  { %387 = shalt.err (!%p384_p0)
}
 0x14e   :  { %248 = dma.vmem_to_hbm [thread:$0]  %s246_s13, 16, %s498_s6, [#allocation4]  }
 0x14f   :  { %394 = dma.done.wait [#allocation4], 16  }
 0x150   :  { %395 = vsyncadd [#allocation4], 4294967280 }
 0x151   :  { %252 = vsyncpa [#allocation3], 1 }
 0x152   :  { %253 = vsyncpa [#allocation7], 1 }
 0x153   :  { %254 = vsyncpa [#allocation4], 1 }
 0x154   :  { %255 = vsyncpa [#allocation5], 1 }

</bundles_post_ra>
